<compile_context>
chip_gen: v7x
topology: tpu7x:2x2x1
jax: 0.10.0
libtpu: 0.0.40
codegen_flags: <defaults>
</compile_context>

<pallas_src>
import jax
import jax.numpy as jnp
from jax.experimental import pallas as pl
from jax.experimental.pallas import tpu as pltpu

LANE = 128
SUBLANE = 8
OUT_LANES = 128   # lane-dense output slab; only column 0 is the real critic value


def _round_up(x, m):
    return (x + m - 1) // m * m


# ----------------------------------------------------------------------------- kernel ---
def _make_critic_kernel(n_hidden):
    """BN scale/shift -> n_hidden x [Linear + swish] -> Linear(feat, 1) (128-lane slab)."""

    def kernel(const_ref, x_ref, wh_ref, bh_ref, wl_ref, out_ref):
        # const_ref: [8, Dp] f32   row0 = BN scale, row1 = BN shift, row2[:128] = last bias
        # x_ref    : [TB, Dp] bf16
        # wh_ref   : [Lh, Dp, Dp] bf16     bh_ref: [Lh, Dp] f32
        # wl_ref   : [Dp, 128] bf16 (only column 0 is the real final weight)
        # out_ref  : [TB, 128] f32
        x = x_ref[...].astype(jnp.float32)
        scale = const_ref[0:1, :]
        shift = const_ref[1:2, :]
        h = x * scale + shift                              # fused BatchNorm (affine folded)

        for i in range(n_hidden):                          # statically unrolled (small L)
            w = wh_ref[i]                                  # [Dp, Dp] bf16
            b = bh_ref[i:i + 1, :]                         # [1, Dp] f32
            h = jnp.dot(h.astype(jnp.bfloat16), w,
                        preferred_element_type=jnp.float32) + b
            # swish in f32; jax.nn.sigmoid lowers to EUP exp + VPU ops (v5e-safe).
            h = h * jax.nn.sigmoid(h)

        y = jnp.dot(h.astype(jnp.bfloat16), wl_ref[...],
                    preferred_element_type=jnp.float32)    # [TB, 128]
        out_ref[...] = y + const_ref[2:3, :OUT_LANES]      # lane-dense unmasked store

    return kernel


# --------------------------------------------------------------------------- packing ----
def pack_params(weights, biases):
    """One-time packing/padding of the MLP params (call at init / after a param update).

    weights[i]: [in_i, out_i] f32 (already transposed to x @ W layout); biases[i]: [1, out_i].
    Returns (w_hidden [Lh,Dp,Dp] bf16, b_hidden [Lh,Dp] f32, w_last [Dp,128] bf16, b_last f32[]).
    """
    n_layers = len(weights)
    assert n_layers >= 2, "expect >= 1 hidden layer plus the final fc"
    n_hidden = n_layers - 1

    feat_dims = [w.shape[0] for w in weights] + [w.shape[1] for w in weights[:-1]]
    d_pad = _round_up(max(feat_dims), LANE)

    w_hidden = jnp.zeros((n_hidden, d_pad, d_pad), jnp.bfloat16)
    b_hidden = jnp.zeros((n_hidden, d_pad), jnp.float32)
    for i in range(n_hidden):
        di, do = weights[i].shape
        w_hidden = w_hidden.at[i, :di, :do].set(weights[i].astype(jnp.bfloat16))
        b_hidden = b_hidden.at[i, :do].set(
            jnp.reshape(biases[i], (-1,)).astype(jnp.float32))

    dl = weights[-1].shape[0]
    w_last = jnp.zeros((d_pad, OUT_LANES), jnp.bfloat16)
    w_last = w_last.at[:dl, :1].set(weights[-1].astype(jnp.bfloat16))
    b_last = jnp.reshape(biases[-1], ()).astype(jnp.float32)
    return w_hidden, b_hidden, w_last, b_last


# --------------------------------------------------------------------------- forward ----
def ddpg_critic_forward(obs_act, w_hidden, b_hidden, w_last, b_last, *,
                        gamma=None, beta=None, running_mean=None, running_var=None,
                        eps=1e-5, tile_b=512):
    """Forward pass.  Training mode by default (batch stats); pass running_mean/var for eval.
    gamma/beta are the BatchNorm1d affine params (default 1/0, matching fresh init)."""
    B, D0 = obs_act.shape
    n_hidden, d_pad, _ = w_hidden.shape
    assert D0 <= d_pad

    x32 = obs_act.astype(jnp.float32)
    if running_mean is not None:                       # eval mode
        mean = running_mean.astype(jnp.float32)
        var = running_var.astype(jnp.float32)
    else:                                              # train mode: biased batch stats
        mean = jnp.mean(x32, axis=0)
        var = jnp.mean((x32 - mean[None, :]) ** 2, axis=0)
    # TODO(synk): BatchNorm running-stat momentum update is a stateful training side effect
    # and is left to the caller; only the forward math is implemented here.
    inv_std = jax.lax.rsqrt(var + eps)
    g = jnp.ones((D0,), jnp.float32) if gamma is None else gamma.astype(jnp.float32)
    bt = jnp.zeros((D0,), jnp.float32) if beta is None else beta.astype(jnp.float32)
    scale = inv_std * g                                # BN(x) = x*scale + shift
    shift = bt - mean * scale

    const = jnp.zeros((SUBLANE, d_pad), jnp.float32)
    const = const.at[0, :D0].set(scale)                # padded lanes stay 0 -> pad cols of h = 0
    const = const.at[1, :D0].set(shift)
    const = const.at[2, 0].set(b_last)

    # --- batch tiling: minimal padding, >= 2 grid steps when possible (v7x megacore) ---
    b_sub = _round_up(B, SUBLANE)
    n_tiles = pl.cdiv(b_sub, tile_b)
    if n_tiles == 1 and b_sub > SUBLANE:
        n_tiles = 2
    tb = _round_up(pl.cdiv(b_sub, n_tiles), SUBLANE)
    grid_n = pl.cdiv(b_sub, tb)
    b_pad = grid_n * tb

    x_padded = jnp.zeros((b_pad, d_pad), jnp.bfloat16).at[:B, :D0].set(
        obs_act.astype(jnp.bfloat16))

    kernel = _make_critic_kernel(n_hidden)

    flops = 2 * b_pad * (n_hidden * d_pad * d_pad + d_pad * OUT_LANES)
    transcendentals = b_pad * d_pad * n_hidden
    bytes_accessed = int(x_padded.size * 2 + w_hidden.size * 2 + b_hidden.size * 4
                         + w_last.size * 2 + const.size * 4 + b_pad * OUT_LANES * 4)

    # Explicit VMEM budget: double-buffered I/O blocks + headroom for in-kernel temporaries.
    io_bytes = 2 * (tb * d_pad * 2 + tb * OUT_LANES * 4 + w_hidden.size * 2
                    + b_hidden.size * 4 + w_last.size * 2 + const.size * 4)
    tmp_bytes = 6 * tb * d_pad * 4
    vmem_limit = int(min(max(2 * (io_bytes + tmp_bytes), 16 << 20), 128 << 20))

    out_padded = pl.pallas_call(
        kernel,
        out_shape=jax.ShapeDtypeStruct((b_pad, OUT_LANES), jnp.float32),
        grid_spec=pltpu.PrefetchScalarGridSpec(
            num_scalar_prefetch=0,
            grid=(grid_n,),
            in_specs=[
                pl.BlockSpec((SUBLANE, d_pad), lambda i: (0, 0)),              # BN const
                pl.BlockSpec((tb, d_pad), lambda i: (i, 0)),                   # x tile (bf16)
                pl.BlockSpec((n_hidden, d_pad, d_pad), lambda i: (0, 0, 0)),   # hidden W
                pl.BlockSpec((n_hidden, d_pad), lambda i: (0, 0)),             # hidden b
                pl.BlockSpec((d_pad, OUT_LANES), lambda i: (0, 0)),            # final W slab
            ],
            out_specs=pl.BlockSpec((tb, OUT_LANES), lambda i: (i, 0)),         # 128-lane out
        ),
        compiler_params=pltpu.CompilerParams(
            dimension_semantics=("parallel",),
            vmem_limit_bytes=vmem_limit),
        cost_estimate=pl.CostEstimate(
            flops=flops,
            transcendentals=transcendentals,
            bytes_accessed=bytes_accessed),
    )(const, x_padded, w_hidden, b_hidden, w_last)

    return out_padded[:B, 0:1]


# ------------------------------------------------------------------------------ init ----
def init_params(key, ddpg_critic_dim):
    """Replicates uniform_init: W ~ U(-1/sqrt(fan_in), 1/sqrt(fan_in)) where
    fan_in = weight.size()[0] == out_features (as written in the PyTorch code); bias = 0.
    Final fc: weight [1, feat] -> lim = 1."""
    weights, biases = [], []
    dims = list(ddpg_critic_dim)
    layer_dims = list(zip(dims[:-1], dims[1:])) + [(dims[-1], 1)]
    for (d_in, d_out) in layer_dims:
        key, sub = jax.random.split(key)
        lim = 1.0 / jnp.sqrt(jnp.float32(d_out))            # PyTorch quirk: fan_in = out dim
        w_torch = jax.random.uniform(sub, (d_out, d_in), jnp.float32, -lim, lim)
        weights.append(jnp.transpose(w_torch))               # stored as [in, out]
        biases.append(jnp.zeros((1, d_out), jnp.float32))
    return weights, biases


# ------------------------------------------------------------------------ references ----
def _ref_forward_fp32(x, weights, biases):
    mean = jnp.mean(x, axis=0, keepdims=True)
    var = jnp.mean((x - mean) ** 2, axis=0, keepdims=True)
    h = (x - mean) / jnp.sqrt(var + 1e-5)
    for i, (w, b) in enumerate(zip(weights, biases)):
        h = h @ w + jnp.reshape(b, (1, -1))
        if i < len(weights) - 1:
            h = h * jax.nn.sigmoid(h)
    return h


def _ref_forward_matched(x, weights, biases):
    """Same numerics as the kernel: bf16 x / bf16 weights into the MXU, f32 accumulation,
    BN stats from the f32 input, BN applied to the bf16-rounded input."""
    x32 = x.astype(jnp.float32)
    mean = jnp.mean(x32, axis=0, keepdims=True)
    var = jnp.mean((x32 - mean) ** 2, axis=0, keepdims=True)
    inv_std = jax.lax.rsqrt(var + 1e-5)
    h = x.astype(jnp.bfloat16).astype(jnp.float32) * inv_std + (0.0 - mean * inv_std)
    for i, (w, b) in enumerate(zip(weights, biases)):
        h = jnp.dot(h.astype(jnp.bfloat16), w.astype(jnp.bfloat16),
                    preferred_element_type=jnp.float32) + jnp.reshape(b, (1, -1))
        if i < len(weights) - 1:
            h = h * jax.nn.sigmoid(h)
    return h


if __name__ == "__main__":
    key = jax.random.PRNGKey(0)

    ddpg_critic_dim = [32, 64, 64]   # obs+act dim -> hidden dims
    batch = 8

    k_x, k_p = jax.random.split(key)
    obs_act = jax.random.normal(k_x, (batch, ddpg_critic_dim[0]), jnp.float32)
    weights, biases = init_params(k_p, ddpg_critic_dim)

    packed = pack_params(weights, biases)          # hoisted: once per param update, not per step

    fwd = jax.jit(lambda x, wh, bh, wl, bl: ddpg_critic_forward(x, wh, bh, wl, bl))
    v = fwd(obs_act, *packed)
    v = jax.block_until_ready(v)
    assert v.shape == (batch, 1)

    # Tight check vs. a reference reproducing the kernel's bf16/f32 numerics.
    ref_m = _ref_forward_matched(obs_act, weights, biases)
    assert jnp.allclose(v, ref_m, atol=2e-3, rtol=2e-3)

    # Loose check vs. the pure-fp32 PyTorch-semantics reference (bf16 rounding only).
    ref_f = _ref_forward_fp32(obs_act, weights, biases)
    assert jnp.allclose(v, ref_f, atol=5e-2, rtol=5e-2)

    print("KERNEL_OK")
</pallas_src>

<mosaic_0001>
module attributes {stable_mosaic.version = 11 : i64} {
  func.func @kernel(%arg0: i32, %arg1: memref<8x128xf32, #tpu.memory_space<vmem>>, %arg2: memref<8x128xbf16, #tpu.memory_space<vmem>>, %arg3: memref<2x128x128xbf16, #tpu.memory_space<vmem>>, %arg4: memref<2x128xf32, #tpu.memory_space<vmem>>, %arg5: memref<128x128xbf16, #tpu.memory_space<vmem>>, %arg6: memref<8x128xf32, #tpu.memory_space<vmem>>) attributes {dimension_semantics = [#tpu.dimension_semantics<parallel>], iteration_bounds = array<i64: 1>, scalar_prefetch = 0 : i64, scratch_operands = 0 : i64, tpu.core_type = #tpu.core_type<tc>, window_params = [{pipeline_mode = #tpu.pipeline_mode<synchronous>, transform_indices = @transform_0, window_bounds = array<i64: 8, 128>}, {transform_indices = @transform_1, window_bounds = array<i64: 8, 128>}, {pipeline_mode = #tpu.pipeline_mode<synchronous>, transform_indices = @transform_2, window_bounds = array<i64: 2, 128, 128>}, {pipeline_mode = #tpu.pipeline_mode<synchronous>, transform_indices = @transform_3, window_bounds = array<i64: 2, 128>}, {pipeline_mode = #tpu.pipeline_mode<synchronous>, transform_indices = @transform_4, window_bounds = array<i64: 128, 128>}, {transform_indices = @transform_5, window_bounds = array<i64: 8, 128>}]} {
    %c0 = arith.constant 0 : index
    %c0_0 = arith.constant 0 : index
    %0 = vector.load %arg2[%c0, %c0_0] : memref<8x128xbf16, #tpu.memory_space<vmem>>, vector<8x128xbf16>
    %1 = arith.extf %0 : vector<8x128xbf16> to vector<8x128xf32>
    %c0_1 = arith.constant 0 : index
    %c0_2 = arith.constant 0 : index
    %2 = vector.load %arg1[%c0_1, %c0_2] : memref<8x128xf32, #tpu.memory_space<vmem>>, vector<1x128xf32>
    %c1 = arith.constant 1 : index
    %c0_3 = arith.constant 0 : index
    %3 = vector.load %arg1[%c1, %c0_3] : memref<8x128xf32, #tpu.memory_space<vmem>>, vector<1x128xf32>
    %4 = vector.broadcast %2 : vector<1x128xf32> to vector<8x128xf32>
    %5 = arith.mulf %1, %4 : vector<8x128xf32>
    %6 = vector.broadcast %3 : vector<1x128xf32> to vector<8x128xf32>
    %7 = arith.addf %5, %6 : vector<8x128xf32>
    %c0_4 = arith.constant 0 : index
    %c0_5 = arith.constant 0 : index
    %c0_6 = arith.constant 0 : index
    %8 = vector.load %arg3[%c0_4, %c0_5, %c0_6] : memref<2x128x128xbf16, #tpu.memory_space<vmem>>, vector<1x128x128xbf16>
    %9 = vector.shape_cast %8 : vector<1x128x128xbf16> to vector<128x128xbf16>
    %c0_7 = arith.constant 0 : index
    %c0_8 = arith.constant 0 : index
    %10 = vector.load %arg4[%c0_7, %c0_8] : memref<2x128xf32, #tpu.memory_space<vmem>>, vector<1x128xf32>
    %11 = arith.truncf %7 : vector<8x128xf32> to vector<8x128xbf16>
    %cst = arith.constant dense<0.000000e+00> : vector<8x128xf32>
    %12 = tpu.matmul %11, %9, %cst {dimension_numbers = #tpu.dot_dimension_numbers<[1], [0], [0], [1], [0, 0, 1, 1], [], []>} : vector<8x128xbf16>, vector<128x128xbf16>, vector<8x128xf32> -> vector<8x128xf32>
    %13 = vector.broadcast %10 : vector<1x128xf32> to vector<8x128xf32>
    %14 = arith.addf %12, %13 : vector<8x128xf32>
    %15 = arith.negf %14 : vector<8x128xf32>
    %16 = math.exp %15 : vector<8x128xf32>
    %cst_9 = arith.constant 1.000000e+00 : f32
    %17 = vector.broadcast %cst_9 : f32 to vector<8x128xf32>
    %18 = arith.addf %17, %16 : vector<8x128xf32>
    %19 = arith.divf %17, %18 : vector<8x128xf32>
    %20 = arith.mulf %14, %19 : vector<8x128xf32>
    %c1_10 = arith.constant 1 : index
    %c0_11 = arith.constant 0 : index
    %c0_12 = arith.constant 0 : index
    %21 = vector.load %arg3[%c1_10, %c0_11, %c0_12] : memref<2x128x128xbf16, #tpu.memory_space<vmem>>, vector<1x128x128xbf16>
    %22 = vector.shape_cast %21 : vector<1x128x128xbf16> to vector<128x128xbf16>
    %c1_13 = arith.constant 1 : index
    %c0_14 = arith.constant 0 : index
    %23 = vector.load %arg4[%c1_13, %c0_14] : memref<2x128xf32, #tpu.memory_space<vmem>>, vector<1x128xf32>
    %24 = arith.truncf %20 : vector<8x128xf32> to vector<8x128xbf16>
    %cst_15 = arith.constant dense<0.000000e+00> : vector<8x128xf32>
    %25 = tpu.matmul %24, %22, %cst_15 {dimension_numbers = #tpu.dot_dimension_numbers<[1], [0], [0], [1], [0, 0, 1, 1], [], []>} : vector<8x128xbf16>, vector<128x128xbf16>, vector<8x128xf32> -> vector<8x128xf32>
    %26 = vector.broadcast %23 : vector<1x128xf32> to vector<8x128xf32>
    %27 = arith.addf %25, %26 : vector<8x128xf32>
    %28 = arith.negf %27 : vector<8x128xf32>
    %29 = math.exp %28 : vector<8x128xf32>
    %cst_16 = arith.constant 1.000000e+00 : f32
    %30 = vector.broadcast %cst_16 : f32 to vector<8x128xf32>
    %31 = arith.addf %30, %29 : vector<8x128xf32>
    %32 = arith.divf %30, %31 : vector<8x128xf32>
    %33 = arith.mulf %27, %32 : vector<8x128xf32>
    %34 = arith.truncf %33 : vector<8x128xf32> to vector<8x128xbf16>
    %c0_17 = arith.constant 0 : index
    %c0_18 = arith.constant 0 : index
    %35 = vector.load %arg5[%c0_17, %c0_18] : memref<128x128xbf16, #tpu.memory_space<vmem>>, vector<128x128xbf16>
    %cst_19 = arith.constant dense<0.000000e+00> : vector<8x128xf32>
    %36 = tpu.matmul %34, %35, %cst_19 {dimension_numbers = #tpu.dot_dimension_numbers<[1], [0], [0], [1], [0, 0, 1, 1], [], []>} : vector<8x128xbf16>, vector<128x128xbf16>, vector<8x128xf32> -> vector<8x128xf32>
    %c2 = arith.constant 2 : index
    %c0_20 = arith.constant 0 : index
    %37 = vector.load %arg1[%c2, %c0_20] : memref<8x128xf32, #tpu.memory_space<vmem>>, vector<1x128xf32>
    %38 = vector.broadcast %37 : vector<1x128xf32> to vector<8x128xf32>
    %39 = arith.addf %36, %38 : vector<8x128xf32>
    %c0_21 = arith.constant 0 : index
    %c0_22 = arith.constant 0 : index
    %40 = vector.load %arg6[%c0_21, %c0_22] : memref<8x128xf32, #tpu.memory_space<vmem>>, vector<8x128xf32>
    tpu.vector_store %arg6[%c0_21, %c0_22], %39 {strides = array<i32>} : memref<8x128xf32, #tpu.memory_space<vmem>>, vector<8x128xf32>,
    return
  }
  func.func @transform_0(%arg0: i32) -> (i32, i32) {
    %c0_i32 = arith.constant 0 : i32
    %c0_i32_0 = arith.constant 0 : i32
    %c0_i32_1 = arith.constant 0 : i32
    return %c0_i32, %c0_i32_0 : i32, i32
  }
  func.func @transform_1(%arg0: i32) -> (i32, i32) {
    %c0_i32 = arith.constant 0 : i32
    %c0_i32_0 = arith.constant 0 : i32
    return %arg0, %c0_i32 : i32, i32
  }
  func.func @transform_2(%arg0: i32) -> (i32, i32, i32) {
    %c0_i32 = arith.constant 0 : i32
    %c0_i32_0 = arith.constant 0 : i32
    %c0_i32_1 = arith.constant 0 : i32
    %c0_i32_2 = arith.constant 0 : i32
    return %c0_i32, %c0_i32_0, %c0_i32_1 : i32, i32, i32
  }
  func.func @transform_3(%arg0: i32) -> (i32, i32) {
    %c0_i32 = arith.constant 0 : i32
    %c0_i32_0 = arith.constant 0 : i32
    %c0_i32_1 = arith.constant 0 : i32
    return %c0_i32, %c0_i32_0 : i32, i32
  }
  func.func @transform_4(%arg0: i32) -> (i32, i32) {
    %c0_i32 = arith.constant 0 : i32
    %c0_i32_0 = arith.constant 0 : i32
    %c0_i32_1 = arith.constant 0 : i32
    return %c0_i32, %c0_i32_0 : i32, i32
  }
  func.func @transform_5(%arg0: i32) -> (i32, i32) {
    %c0_i32 = arith.constant 0 : i32
    %c0_i32_0 = arith.constant 0 : i32
    return %arg0, %c0_i32 : i32, i32
  }
}

</mosaic_0001>

<bundles_post_ra>
// kernel: _lambda_.1
= control target key start
LH: loop header
LB: loop body
LE: loop exit
PB: predicated region body
PF: predicated region fallthrough
CT: control target
= control target key end

     0   :  { %10 = vsyncpa [#allocation3], 0  ;;  %s579_s18 = smov [#allocation2]   ;;  %s701_s0 = inlined_call_operand.vmem [shape: f32[8,128], index: 0, kind: input, shape index: {}]   ;;  %s702_s1 = inlined_call_operand.vmem [shape: bf16[8,128], index: 1, kind: input, shape index: {}]   ;;  %s703_s2 = inlined_call_operand.hbm [shape: bf16[2,128,128], index: 2, kind: input, shape index: {}]   ;;  %s704_s3 = inlined_call_operand.vmem [shape: f32[2,128], index: 3, kind: input, shape index: {}]   ;;  %s705_s4 = inlined_call_operand.vmem [shape: bf16[128,128], index: 4, kind: input, shape index: {}]   ;;  %s706_s5 = inlined_call_operand.vmem [shape: f32[8,128], index: 5, kind: output, shape index: {}]  }
   0x1   :  { %s20_s19 = sshll.u32 %s579_s18, 4  ;;  %s555_s22 = scalar_lea.hbm %s703_s2, 2048  ;;  %s21_s19 = int_to_ptr.vmem [resolvable:$true] %s20_s19 }
   0x2   :  { %p556_p0 = scmp.ne.s32.totalorder %s703_s2, %s555_s22  ;;  %p559_p1 = scmp.lt.u32.totalorder %s555_s22, %s703_s2 }
   0x4   :  { %p561_p2 = pnand %p559_p1, %p556_p0 }
   0x6   :  { %564 = shalt.err (!%p561_p2)
}
   0x7   :  { %s565_s27 = scalar_lea.vmem %s21_s19, 2048  ;;  %p570_p4 = scmp.lt.s32.totalorder %s21_s19, %s21_s19 }
   0x8   :  { %p566_p3 = scmp.ne.s32.totalorder %s21_s19, %s565_s27  ;;  %p571_p5 = scmp.lt.s32.totalorder %s565_s27, %s565_s27 }
   0xa   :  { %p572_p6 = por %p571_p5, %p570_p4 }
   0xc   :  { %p573_p7 = pnand %p572_p6, %p566_p3 }
   0xe   :  { %576 = shalt.err (!%p573_p7)
}
   0xf   :  { %s580_s28 = smov 64   ;;  %s581_s29 = smov 4  }
  0x10   :  { %26 = dma.hbm_to_vmem [thread:$0]  %s703_s2, 2048, %s21_s19, [#allocation3], %s580_s28, %s580_s28, %s581_s29  }
  0x11   :  { %577 = dma.done.wait [#allocation3], 2048  }
  0x12   :  { %578 = vsyncadd [#allocation3], 4294965248  ;;  %v582_v0 = vmov 0.0   ;;  %vm583_vm0 = vmmov 0   ;;  %v523_v1 = vld [vmem:[#allocation2] sm:$0xff]   ;;  %v524_v2 = vld [vmem:[#allocation2 + $0x8] sm:$0xff]  }
  0x13   :  { %458 = vmatprep.subr.bf16.mxu0 %v582_v0  ;;  %474 = vmatprep.mubr.msk.bf16.mxu0 %vm583_vm0, %v582_v0  ;;  %v525_v3 = vld [vmem:[#allocation2 + $0x10] sm:$0xff]   ;;  %v526_v4 = vld [vmem:[#allocation2 + $0x18] sm:$0xff]   ;;  %v527_v5 = vld [vmem:[#allocation2 + $0x20] sm:$0xff]  }
  0x14   :  { %478 = vmatprep.subr.bf16.mxu1 %v582_v0  ;;  %494 = vmatprep.mubr.msk.bf16.mxu1 %vm583_vm0, %v582_v0  ;;  %v35_v6 = vld [vmem:[%s702_s1] sm:$0xf]  ;;  %v528_v7 = vld [vmem:[#allocation2 + $0x28] sm:$0xff]   ;;  %v529_v11 = vld [vmem:[#allocation2 + $0x30] sm:$0xff]  }
  0x15   :  { %459 = vmatpush3.bf16.msra.mxu0 %v523_v1  ;;  %v400_v8 = vld [vmem:[%s701_s0] ss:$0 sm:$0xff]  ;;  %v36_v9 = vunpack.c.l.bf16 %v35_v6  ;;  %v401_v12 = vld [vmem:[%s701_s0 + $0x1] ss:$0 sm:$0xff]  ;;  %v530_v14 = vld [vmem:[#allocation2 + $0x38] sm:$0xff]  }
  0x16   :  { %460 = vmatprep.subr.bf16.mxu0 %v582_v0  ;;  %v531_v16 = vld [vmem:[#allocation2 + $0x40] sm:$0xff]   ;;  %v532_v17 = vld [vmem:[#allocation2 + $0x48] sm:$0xff]   ;;  %v533_v18 = vld [vmem:[#allocation2 + $0x50] sm:$0xff]  }
  0x17   :  { %v43_v10 = vmul.f32 %v400_v8, %v36_v9  ;;  %479 = vmatpush3.bf16.msra.mxu1 %v531_v16  ;;  %v534_v19 = vld [vmem:[#allocation2 + $0x58] sm:$0xff]   ;;  %v535_v20 = vld [vmem:[#allocation2 + $0x60] sm:$0xff]   ;;  %v536_v21 = vld [vmem:[#allocation2 + $0x68] sm:$0xff]  }
  0x18   :  { %480 = vmatprep.subr.bf16.mxu1 %v582_v0  ;;  %v537_v22 = vld [vmem:[#allocation2 + $0x70] sm:$0xff]   ;;  %v538_v23 = vld [vmem:[#allocation2 + $0x78] sm:$0xff]   ;;  %v402_v24 = vld [vmem:[%s704_s3] ss:$0 sm:$0xff] }
  0x19   :  { %461 = vmatpush3.bf16.msra.mxu0 %v524_v2  ;;  %v48_v13 = vadd.f32 %v401_v12, %v43_v10  ;;  %v539_v36 = vld [vmem:[%s705_s4] sm:$0xff]   ;;  %v540_v37 = vld [vmem:[%s705_s4 + $0x8] sm:$0xff]   ;;  %v541_v38 = vld [vmem:[%s705_s4 + $0x10] sm:$0xff]  }
  0x1a   :  { %462 = vmatprep.subr.bf16.mxu0 %v582_v0  ;;  %v542_v39 = vld [vmem:[%s705_s4 + $0x18] sm:$0xff]   ;;  %v543_v40 = vld [vmem:[%s705_s4 + $0x20] sm:$0xff]   ;;  %v544_v41 = vld [vmem:[%s705_s4 + $0x28] sm:$0xff]  }
  0x1b   :  { %v66_v15 = vpack.c.bf16 %v48_v13, %v48_v13  ;;  %481 = vmatpush3.bf16.msra.mxu1 %v532_v17  ;;  %v545_v42 = vld [vmem:[%s705_s4 + $0x30] sm:$0xff]   ;;  %v546_v43 = vld [vmem:[%s705_s4 + $0x38] sm:$0xff]   ;;  %v412_v44 = vld [vmem:[%s704_s3 + $0x1] ss:$0 sm:$0xff] }
  0x1c   :  { %482 = vmatprep.subr.bf16.mxu1 %v582_v0  ;;  %v422_v56 = vld [vmem:[%s701_s0 + $0x2] ss:$0 sm:$0xff] }
  0x1d   :  { %463 = vmatpush3.bf16.msra.mxu0 %v525_v3 }
  0x1e   :  { %464 = vmatprep.subr.bf16.mxu0 %v582_v0 }
  0x1f   :  { %483 = vmatpush3.bf16.msra.mxu1 %v533_v18 }
  0x20   :  { %484 = vmatprep.subr.bf16.mxu1 %v582_v0 }
  0x21   :  { %465 = vmatpush3.bf16.msra.mxu0 %v526_v4 }
  0x22   :  { %466 = vmatprep.subr.bf16.mxu0 %v582_v0 }
  0x23   :  { %485 = vmatpush3.bf16.msra.mxu1 %v534_v19 }
  0x24   :  { %486 = vmatprep.subr.bf16.mxu1 %v582_v0 }
  0x25   :  { %467 = vmatpush3.bf16.msra.mxu0 %v527_v5 }
  0x26   :  { %468 = vmatprep.subr.bf16.mxu0 %v582_v0 }
  0x27   :  { %487 = vmatpush3.bf16.msra.mxu1 %v535_v20 }
  0x28   :  { %488 = vmatprep.subr.bf16.mxu1 %v582_v0 }
  0x29   :  { %469 = vmatpush3.bf16.msra.mxu0 %v528_v7 }
  0x2a   :  { %470 = vmatprep.subr.bf16.mxu0 %v582_v0 }
  0x2b   :  { %489 = vmatpush3.bf16.msra.mxu1 %v536_v21 }
  0x2c   :  { %490 = vmatprep.subr.bf16.mxu1 %v582_v0 }
  0x2d   :  { %471 = vmatpush3.bf16.msra.mxu0 %v529_v11 }
  0x2e   :  { %472 = vmatprep.subr.bf16.mxu0 %v582_v0 }
  0x2f   :  { %491 = vmatpush3.bf16.msra.mxu1 %v537_v22 }
  0x30   :  { %492 = vmatprep.subr.bf16.mxu1 %v582_v0 }
  0x31   :  { %473 = vmatpush3.bf16.msra.mxu0 %v530_v14 }
  0x32   :  { %498 = vmatprep.subr.bf16.mxu0 %v582_v0 }
  0x33   :  { %493 = vmatpush3.bf16.msra.mxu1 %v538_v23 }
  0x34   :  { %475 = vmatmul.mubr.bf16.vlgmr.msra.gmra.mrb[0].mxu0 %v66_v15 }
  0x35   :  { %514 = vmatprep.mubr.msk.bf16.mxu0 %vm583_vm0, %v582_v0  ;;  %499 = vmatpush3.bf16.msra.mxu0 %v539_v36 }
  0x36   :  { %500 = vmatprep.subr.bf16.mxu0 %v582_v0 }
  0x39   :  { %501 = vmatpush3.bf16.msra.mxu0 %v540_v37 }
  0x3a   :  { %502 = vmatprep.subr.bf16.mxu0 %v582_v0 }
  0x3d   :  { %503 = vmatpush3.bf16.msra.mxu0 %v541_v38 }
  0x3e   :  { %504 = vmatprep.subr.bf16.mxu0 %v582_v0 }
  0x41   :  { %505 = vmatpush3.bf16.msra.mxu0 %v542_v39 }
  0x42   :  { %506 = vmatprep.subr.bf16.mxu0 %v582_v0 }
  0x45   :  { %507 = vmatpush3.bf16.msra.mxu0 %v543_v40 }
  0x46   :  { %508 = vmatprep.subr.bf16.mxu0 %v582_v0 }
  0x49   :  { %509 = vmatpush3.bf16.msra.mxu0 %v544_v41 }
  0x4a   :  { %510 = vmatprep.subr.bf16.mxu0 %v582_v0 }
  0x4d   :  { %511 = vmatpush3.bf16.msra.mxu0 %v545_v42 }
  0x4e   :  { %512 = vmatprep.subr.bf16.mxu0 %v582_v0 }
  0x51   :  { %513 = vmatpush3.bf16.msra.mxu0 %v546_v43 }
 0x107   :  { %v153_v25 = vpop.f32.mrb[0].mxu0 }
 0x108   :  { %v154_v26 = vadd.f32 %v402_v24, %v153_v25  ;;  %v476_v27 = vpop.f32.mrb[1].mxu0 }
 0x109   :  { %v156_v28 = vpop.f32.mrb[2].mxu0 }
 0x10a   :  { %v411_v29 = vmul.f32 -1.442695, %v154_v26  ;;  %v477_v30 = vpop.f32.mrb[3].mxu0 }
 0x10c   :  { %547 = vpow2.f32 %v411_v29 }
 0x116   :  { %v548_v31 = vpop.eup %547 }
 0x117   :  { %v162_v32 = vadd.f32 1.0, %v548_v31 }
 0x119   :  { %549 = vrcp.f32 %v162_v32 }
 0x123   :  { %v550_v33 = vpop.eup %549 }
 0x124   :  { %v165_v34 = vmul.f32 %v550_v33, %v154_v26 }
 0x126   :  { %v184_v35 = vpack.c.bf16 %v165_v34, %v165_v34 }
 0x128   :  { %495 = vmatmul.mubr.bf16.vlgmr.msra.gmra.mrb[0].mxu1 %v184_v35 }
 0x1fb   :  { %v271_v45 = vpop.f32.mrb[0].mxu1 }
 0x1fc   :  { %v272_v46 = vadd.f32 %v412_v44, %v271_v45  ;;  %v496_v47 = vpop.f32.mrb[1].mxu1 }
 0x1fd   :  { %v274_v48 = vpop.f32.mrb[2].mxu1 }
 0x1fe   :  { %v421_v49 = vmul.f32 -1.442695, %v272_v46  ;;  %v497_v50 = vpop.f32.mrb[3].mxu1 }
 0x200   :  { %551 = vpow2.f32 %v421_v49 }
 0x20a   :  { %v552_v51 = vpop.eup %551 }
 0x20b   :  { %v280_v52 = vadd.f32 1.0, %v552_v51 }
 0x20d   :  { %553 = vrcp.f32 %v280_v52 }
 0x217   :  { %v554_v53 = vpop.eup %553 }
 0x218   :  { %v283_v54 = vmul.f32 %v554_v53, %v272_v46 }
 0x21a   :  { %v284_v55 = vpack.c.bf16 %v283_v54, %v283_v54 }
 0x21c   :  { %515 = vmatmul.mubr.bf16.vlgmr.msra.gmra.mrb[4].mxu0 %v284_v55 }
 0x2ef   :  { %v388_v57 = vpop.f32.mrb[4].mxu0 }
 0x2f0   :  { %v389_v58 = vadd.f32 %v422_v56, %v388_v57  ;;  %v516_v59 = vpop.f32.mrb[5].mxu0 }
 0x2f1   :  { %v391_v60 = vpop.f32.mrb[6].mxu0 }
 0x2f2   :  { %394 = vst [vmem:[%s706_s5] sm:$0xff] %v389_v58  ;;  %v517_v61 = vpop.f32.mrb[7].mxu0 }
 0x2f3   :  { %399 = vsyncpa [#allocation3], 1 }

</bundles_post_ra>
